<compile_context>
chip_gen: v5e
topology: v5e:2x2
jax: 0.10.0
libtpu: 0.0.40
codegen_flags: <defaults>
</compile_context>

<pallas_src>
import functools

import jax
import jax.numpy as jnp
from jax import lax
from jax.experimental import pallas as pl
from jax.experimental.pallas import tpu as pltpu


def _round_up(x, m):
    return (x + m - 1) // m * m


# ------------------------------ fused RNN kernel -----------------------------------

def _fused_rnn_kernel(emb_ref, wih_ref, whh_ref, brnn_ref, wfc_ref, bfc_ref,
                      out_ref, h_ref, *, seq_len, tt_chunk, mask_tail):
    # emb_ref : (TT, TB, E)     compute dtype -- time-major embedding chunk
    # wih_ref : (E, H_pad)      compute dtype
    # whh_ref : (H_pad, H_pad)  compute dtype
    # brnn_ref: (1, H_pad)      f32  (b_ih + b_hh, zero-padded)
    # wfc_ref : (H_pad, C_pad)  compute dtype
    # bfc_ref : (1, C_pad)      f32
    # out_ref : (TB, C_pad)     f32  -- resident across the chunk axis, written at end
    # h_ref   : (TB, H_pad)     f32  VMEM scratch (hidden-state carry)
    tc = pl.program_id(1)

    @pl.when(tc == 0)
    def _init():
        h_ref[...] = jnp.zeros_like(h_ref)

    # Hoist weight loads and the bias broadcast out of the unrolled time loop
    # (JAX does not CSE broadcast_in_dim inside loops).
    wih = wih_ref[...]
    whh = whh_ref[...]
    brnn = jnp.broadcast_to(brnn_ref[...], h_ref.shape)     # (TB, H_pad) f32

    def step(tt, carry):
        h_prev = h_ref[...]                                  # (TB, H_pad) f32
        x_t = emb_ref[tt]                                    # (TB, E)
        # Input projection of step t+1 is independent of h_t, so the unrolled
        # schedule can hide it under the serial tanh / W_hh chain.
        xp = jnp.dot(x_t, wih, preferred_element_type=jnp.float32)
        hp = jnp.dot(h_prev.astype(whh.dtype), whh,
                     preferred_element_type=jnp.float32)
        h_new = jnp.tanh(xp + hp + brnn)                     # elementwise kept in f32
        if mask_tail:
            # Time axis was padded up to a multiple of TT: freeze h on padded steps.
            t_glob = tc * tt_chunk + tt
            h_new = jnp.where(t_glob < seq_len, h_new, h_prev)
        h_ref[...] = h_new
        return carry

    lax.fori_loop(0, tt_chunk, step, 0, unroll=True)

    @pl.when(tc == pl.num_programs(1) - 1)
    def _final():
        # Dropout(p=0.2) in eval mode == identity.
        out_ref[...] = (
            jnp.dot(h_ref[...].astype(wfc_ref.dtype), wfc_ref[...],
                    preferred_element_type=jnp.float32)
            + bfc_ref[...]
        ).astype(out_ref.dtype)


# --------------------------------- wrapper ----------------------------------------

def simple_rnn_forward(x_ids, params, *, compute_dtype=jnp.float32):
    """x_ids: (B, T) int32 token ids; returns (B, num_classes) f32 logits."""
    emb_table = params["embedding"]          # (V, E)
    w_ih = params["w_ih"]                    # (H, E)
    w_hh = params["w_hh"]                    # (H, H)
    b_ih = params["b_ih"]                    # (H,)
    b_hh = params["b_hh"]                    # (H,)
    w_fc = params["w_fc"]                    # (C, H)
    b_fc = params["b_fc"]                    # (C,)

    B, T = x_ids.shape
    E = emb_table.shape[1]
    H = w_hh.shape[0]
    C = w_fc.shape[0]

    LANE = 128
    itemsize = jnp.dtype(compute_dtype).itemsize
    SUB = {4: 8, 2: 16, 1: 32}.get(itemsize, 8)   # sublane granule of compute dtype

    H_pad = _round_up(H, LANE)
    C_pad = _round_up(C, LANE)

    # ---- batch tiling: TB up to 256; >=2 tiles when possible (v7x has 2 TCs) -------
    B_pad0 = _round_up(B, SUB)
    if B_pad0 >= 2 * SUB:
        TB = min(256, _round_up(-(-B_pad0 // 2), SUB))
    else:
        TB = B_pad0
    B_pad = _round_up(B_pad0, TB)
    nb = B_pad // TB

    # ---- time chunking: amortize per-grid-step overhead, sized for v7x VMEM --------
    emb_block_budget = 8 * 1024 * 1024        # double-buffered emb block <= ~8 MiB
    tt_vmem = max(1, emb_block_budget // (2 * TB * max(E, 1) * itemsize))
    TT = max(1, min(64, T, tt_vmem))
    T_pad = _round_up(T, TT)
    nc = T_pad // TT
    mask_tail = (T_pad != T)

    # ---- glue: gather directly in time-major layout (no big activation transpose) --
    ids = jnp.zeros((B_pad, T_pad), jnp.int32).at[:B, :T].set(x_ids)
    emb_tb = jnp.take(emb_table.astype(compute_dtype), ids.T, axis=0)  # (T_pad,B_pad,E)

    # Weights: transpose once, zero-pad to lane-dense shapes.  Zero padding keeps the
    # padded hidden lanes exactly 0 through the recurrence (tanh(0) = 0).
    wih_t = jnp.zeros((E, H_pad), compute_dtype).at[:, :H].set(
        w_ih.T.astype(compute_dtype))
    whh_t = jnp.zeros((H_pad, H_pad), compute_dtype).at[:H, :H].set(
        w_hh.T.astype(compute_dtype))
    brnn = jnp.zeros((1, H_pad), jnp.float32).at[0, :H].set(
        (b_ih + b_hh).astype(jnp.float32))
    wfc_t = jnp.zeros((H_pad, C_pad), compute_dtype).at[:H, :C].set(
        w_fc.T.astype(compute_dtype))
    bfc = jnp.zeros((1, C_pad), jnp.float32).at[0, :C].set(b_fc.astype(jnp.float32))

    kernel = functools.partial(
        _fused_rnn_kernel, seq_len=T, tt_chunk=TT, mask_tail=mask_tail)

    out_pad = pl.pallas_call(
        kernel,
        out_shape=jax.ShapeDtypeStruct((B_pad, C_pad), jnp.float32),
        grid=(nb, nc),
        in_specs=[
            pl.BlockSpec((TT, TB, E), lambda i, tc: (tc, i, 0)),
            pl.BlockSpec((E, H_pad), lambda i, tc: (0, 0)),
            pl.BlockSpec((H_pad, H_pad), lambda i, tc: (0, 0)),
            pl.BlockSpec((1, H_pad), lambda i, tc: (0, 0)),
            pl.BlockSpec((H_pad, C_pad), lambda i, tc: (0, 0)),
            pl.BlockSpec((1, C_pad), lambda i, tc: (0, 0)),
        ],
        out_specs=pl.BlockSpec((TB, C_pad), lambda i, tc: (i, 0)),
        scratch_shapes=[pltpu.VMEM((TB, H_pad), jnp.float32)],
        compiler_params=pltpu.CompilerParams(
            dimension_semantics=("parallel", "arbitrary"),
            vmem_limit_bytes=48 * 1024 * 1024,   # safe on v7x (64 MiB) and v5e/v6e
        ),
    )(emb_tb, wih_t, whh_t, brnn, wfc_t, bfc)

    return out_pad[:B, :C]


# --------------------------------- params / reference ------------------------------

def init_params(key, vocab_size, embedding_dim, hidden_dim, num_classes):
    ks = jax.random.split(key, 7)
    emb = 0.1 * jax.random.normal(ks[0], (vocab_size, embedding_dim), jnp.float32)
    emb = emb.at[0].set(0.0)  # padding_idx=0 row initialized to zeros
    scale_rnn = 1.0 / jnp.sqrt(hidden_dim)
    scale_fc = 1.0 / jnp.sqrt(hidden_dim)
    return {
        "embedding": emb,
        "w_ih": scale_rnn * jax.random.normal(ks[1], (hidden_dim, embedding_dim), jnp.float32),
        "w_hh": scale_rnn * jax.random.normal(ks[2], (hidden_dim, hidden_dim), jnp.float32),
        "b_ih": scale_rnn * jax.random.normal(ks[3], (hidden_dim,), jnp.float32),
        "b_hh": scale_rnn * jax.random.normal(ks[4], (hidden_dim,), jnp.float32),
        "w_fc": scale_fc * jax.random.normal(ks[5], (num_classes, hidden_dim), jnp.float32),
        "b_fc": scale_fc * jax.random.normal(ks[6], (num_classes,), jnp.float32),
    }


def _reference_forward(x_ids, params):
    """Pure-JAX reference for correctness check."""
    emb = jnp.take(params["embedding"], x_ids, axis=0)  # (B, T, E)
    B, T, E = emb.shape
    H = params["w_hh"].shape[0]
    h = jnp.zeros((B, H), jnp.float32)
    for t in range(T):
        h = jnp.tanh(
            emb[:, t, :] @ params["w_ih"].T
            + h @ params["w_hh"].T
            + params["b_ih"]
            + params["b_hh"]
        )
    return h @ params["w_fc"].T + params["b_fc"]


if __name__ == "__main__":
    vocab_size, embedding_dim, hidden_dim, num_classes = 50, 32, 32, 4
    B, T = 2, 8

    key = jax.random.PRNGKey(0)
    k_param, k_ids = jax.random.split(key)
    params = init_params(k_param, vocab_size, embedding_dim, hidden_dim, num_classes)
    x_ids = jax.random.randint(k_ids, (B, T), 0, vocab_size, dtype=jnp.int32)

    ref = _reference_forward(x_ids, params)

    # f32 path (tolerance allows for MXU default-precision matmul differences vs XLA).
    out = simple_rnn_forward(x_ids, params, compute_dtype=jnp.float32)
    out = jax.block_until_ready(out)
    assert out.shape == (B, num_classes)
    assert jnp.allclose(out, ref, atol=2e-3, rtol=2e-3), (out, ref)

    # bf16 MXU-operand path (f32 accumulation / elementwise): looser tolerance because
    # bf16 rounding compounds through the tanh recurrence.
    out_bf16 = simple_rnn_forward(x_ids, params, compute_dtype=jnp.bfloat16)
    out_bf16 = jax.block_until_ready(out_bf16)
    assert out_bf16.shape == (B, num_classes)
    assert jnp.allclose(out_bf16, ref, atol=1e-1, rtol=1e-1), (out_bf16, ref)

    print("KERNEL_OK")
</pallas_src>

<mosaic_0001>
module attributes {stable_mosaic.version = 11 : i64} {
  func.func @_fused_rnn_kernel(%arg0: i32, %arg1: i32, %arg2: memref<8x8x32xf32, #tpu.memory_space<vmem>>, %arg3: memref<32x128xf32, #tpu.memory_space<vmem>>, %arg4: memref<128x128xf32, #tpu.memory_space<vmem>>, %arg5: memref<1x128xf32, #tpu.memory_space<vmem>>, %arg6: memref<128x128xf32, #tpu.memory_space<vmem>>, %arg7: memref<1x128xf32, #tpu.memory_space<vmem>>, %arg8: memref<8x128xf32, #tpu.memory_space<vmem>>, %arg9: memref<8x128xf32, #tpu.memory_space<vmem>>) attributes {dimension_semantics = [#tpu.dimension_semantics<parallel>, #tpu.dimension_semantics<arbitrary>], iteration_bounds = array<i64: 1, 1>, scalar_prefetch = 0 : i64, scratch_operands = 1 : i64, tpu.core_type = #tpu.core_type<tc>, window_params = [{transform_indices = @transform_0, window_bounds = array<i64: 8, 8, 32>}, {pipeline_mode = #tpu.pipeline_mode<synchronous>, transform_indices = @transform_1, window_bounds = array<i64: 32, 128>}, {pipeline_mode = #tpu.pipeline_mode<synchronous>, transform_indices = @transform_2, window_bounds = array<i64: 128, 128>}, {pipeline_mode = #tpu.pipeline_mode<synchronous>, transform_indices = @transform_3, window_bounds = array<i64: 1, 128>}, {pipeline_mode = #tpu.pipeline_mode<synchronous>, transform_indices = @transform_4, window_bounds = array<i64: 128, 128>}, {pipeline_mode = #tpu.pipeline_mode<synchronous>, transform_indices = @transform_5, window_bounds = array<i64: 1, 128>}, {transform_indices = @transform_6, window_bounds = array<i64: 8, 128>}]} {
    %c0_i32 = arith.constant 0 : i32
    %0 = arith.cmpi eq, %arg1, %c0_i32 : i32
    %1 = arith.extui %0 : i1 to i32
    %c0_i32_0 = arith.constant 0 : i32
    %2 = arith.cmpi ne, %1, %c0_i32_0 : i32
    scf.if %2 {
      %cst_72 = arith.constant 0.000000e+00 : f32
      %91 = vector.broadcast %cst_72 : f32 to vector<8x128xf32>
      %c0_73 = arith.constant 0 : index
      %c0_74 = arith.constant 0 : index
      %92 = vector.load %arg9[%c0_73, %c0_74] : memref<8x128xf32, #tpu.memory_space<vmem>>, vector<8x128xf32>
      tpu.vector_store %arg9[%c0_73, %c0_74], %91 {strides = array<i32>} : memref<8x128xf32, #tpu.memory_space<vmem>>, vector<8x128xf32>,
    } else {
    }
    %c0 = arith.constant 0 : index
    %c0_1 = arith.constant 0 : index
    %3 = vector.load %arg3[%c0, %c0_1] : memref<32x128xf32, #tpu.memory_space<vmem>>, vector<32x128xf32>
    %c0_2 = arith.constant 0 : index
    %c0_3 = arith.constant 0 : index
    %4 = vector.load %arg4[%c0_2, %c0_3] : memref<128x128xf32, #tpu.memory_space<vmem>>, vector<128x128xf32>
    %c0_4 = arith.constant 0 : index
    %c0_5 = arith.constant 0 : index
    %5 = vector.load %arg5[%c0_4, %c0_5] : memref<1x128xf32, #tpu.memory_space<vmem>>, vector<1x128xf32>
    %6 = vector.shape_cast %5 : vector<1x128xf32> to vector<1x128xf32>
    %7 = vector.broadcast %6 : vector<1x128xf32> to vector<8x128xf32>
    %c0_i32_6 = arith.constant 0 : i32
    %c0_7 = arith.constant 0 : index
    %c0_8 = arith.constant 0 : index
    %8 = vector.load %arg9[%c0_7, %c0_8] : memref<8x128xf32, #tpu.memory_space<vmem>>, vector<8x128xf32>
    %9 = arith.index_cast %c0_i32_6 : i32 to index
    %c0_9 = arith.constant 0 : index
    %c0_10 = arith.constant 0 : index
    %10 = vector.load %arg2[%9, %c0_9, %c0_10] : memref<8x8x32xf32, #tpu.memory_space<vmem>>, vector<1x8x32xf32>
    %11 = vector.shape_cast %10 : vector<1x8x32xf32> to vector<8x32xf32>
    %cst = arith.constant dense<0.000000e+00> : vector<8x128xf32>
    %12 = tpu.matmul %11, %3, %cst {dimension_numbers = #tpu.dot_dimension_numbers<[1], [0], [0], [1], [0, 0, 1, 1], [], []>} : vector<8x32xf32>, vector<32x128xf32>, vector<8x128xf32> -> vector<8x128xf32>
    %cst_11 = arith.constant dense<0.000000e+00> : vector<8x128xf32>
    %13 = tpu.matmul %8, %4, %cst_11 {dimension_numbers = #tpu.dot_dimension_numbers<[1], [0], [0], [1], [0, 0, 1, 1], [], []>} : vector<8x128xf32>, vector<128x128xf32>, vector<8x128xf32> -> vector<8x128xf32>
    %14 = arith.addf %12, %13 : vector<8x128xf32>
    %15 = arith.addf %14, %7 : vector<8x128xf32>
    %16 = math.tanh %15 : vector<8x128xf32>
    %c0_12 = arith.constant 0 : index
    %c0_13 = arith.constant 0 : index
    %17 = vector.load %arg9[%c0_12, %c0_13] : memref<8x128xf32, #tpu.memory_space<vmem>>, vector<8x128xf32>
    tpu.vector_store %arg9[%c0_12, %c0_13], %16 {strides = array<i32>} : memref<8x128xf32, #tpu.memory_space<vmem>>, vector<8x128xf32>,
    %c1_i32 = arith.constant 1 : i32
    %c0_14 = arith.constant 0 : index
    %c0_15 = arith.constant 0 : index
    %18 = vector.load %arg9[%c0_14, %c0_15] : memref<8x128xf32, #tpu.memory_space<vmem>>, vector<8x128xf32>
    %19 = arith.index_cast %c1_i32 : i32 to index
    %c0_16 = arith.constant 0 : index
    %c0_17 = arith.constant 0 : index
    %20 = vector.load %arg2[%19, %c0_16, %c0_17] : memref<8x8x32xf32, #tpu.memory_space<vmem>>, vector<1x8x32xf32>
    %21 = vector.shape_cast %20 : vector<1x8x32xf32> to vector<8x32xf32>
    %cst_18 = arith.constant dense<0.000000e+00> : vector<8x128xf32>
    %22 = tpu.matmul %21, %3, %cst_18 {dimension_numbers = #tpu.dot_dimension_numbers<[1], [0], [0], [1], [0, 0, 1, 1], [], []>} : vector<8x32xf32>, vector<32x128xf32>, vector<8x128xf32> -> vector<8x128xf32>
    %cst_19 = arith.constant dense<0.000000e+00> : vector<8x128xf32>
    %23 = tpu.matmul %18, %4, %cst_19 {dimension_numbers = #tpu.dot_dimension_numbers<[1], [0], [0], [1], [0, 0, 1, 1], [], []>} : vector<8x128xf32>, vector<128x128xf32>, vector<8x128xf32> -> vector<8x128xf32>
    %24 = arith.addf %22, %23 : vector<8x128xf32>
    %25 = arith.addf %24, %7 : vector<8x128xf32>
    %26 = math.tanh %25 : vector<8x128xf32>
    %c0_20 = arith.constant 0 : index
    %c0_21 = arith.constant 0 : index
    %27 = vector.load %arg9[%c0_20, %c0_21] : memref<8x128xf32, #tpu.memory_space<vmem>>, vector<8x128xf32>
    tpu.vector_store %arg9[%c0_20, %c0_21], %26 {strides = array<i32>} : memref<8x128xf32, #tpu.memory_space<vmem>>, vector<8x128xf32>,
    %c2_i32 = arith.constant 2 : i32
    %c0_22 = arith.constant 0 : index
    %c0_23 = arith.constant 0 : index
    %28 = vector.load %arg9[%c0_22, %c0_23] : memref<8x128xf32, #tpu.memory_space<vmem>>, vector<8x128xf32>
    %29 = arith.index_cast %c2_i32 : i32 to index
    %c0_24 = arith.constant 0 : index
    %c0_25 = arith.constant 0 : index
    %30 = vector.load %arg2[%29, %c0_24, %c0_25] : memref<8x8x32xf32, #tpu.memory_space<vmem>>, vector<1x8x32xf32>
    %31 = vector.shape_cast %30 : vector<1x8x32xf32> to vector<8x32xf32>
    %cst_26 = arith.constant dense<0.000000e+00> : vector<8x128xf32>
    %32 = tpu.matmul %31, %3, %cst_26 {dimension_numbers = #tpu.dot_dimension_numbers<[1], [0], [0], [1], [0, 0, 1, 1], [], []>} : vector<8x32xf32>, vector<32x128xf32>, vector<8x128xf32> -> vector<8x128xf32>
    %cst_27 = arith.constant dense<0.000000e+00> : vector<8x128xf32>
    %33 = tpu.matmul %28, %4, %cst_27 {dimension_numbers = #tpu.dot_dimension_numbers<[1], [0], [0], [1], [0, 0, 1, 1], [], []>} : vector<8x128xf32>, vector<128x128xf32>, vector<8x128xf32> -> vector<8x128xf32>
    %34 = arith.addf %32, %33 : vector<8x128xf32>
    %35 = arith.addf %34, %7 : vector<8x128xf32>
    %36 = math.tanh %35 : vector<8x128xf32>
    %c0_28 = arith.constant 0 : index
    %c0_29 = arith.constant 0 : index
    %37 = vector.load %arg9[%c0_28, %c0_29] : memref<8x128xf32, #tpu.memory_space<vmem>>, vector<8x128xf32>
    tpu.vector_store %arg9[%c0_28, %c0_29], %36 {strides = array<i32>} : memref<8x128xf32, #tpu.memory_space<vmem>>, vector<8x128xf32>,
    %c3_i32 = arith.constant 3 : i32
    %c0_30 = arith.constant 0 : index
    %c0_31 = arith.constant 0 : index
    %38 = vector.load %arg9[%c0_30, %c0_31] : memref<8x128xf32, #tpu.memory_space<vmem>>, vector<8x128xf32>
    %39 = arith.index_cast %c3_i32 : i32 to index
    %c0_32 = arith.constant 0 : index
    %c0_33 = arith.constant 0 : index
    %40 = vector.load %arg2[%39, %c0_32, %c0_33] : memref<8x8x32xf32, #tpu.memory_space<vmem>>, vector<1x8x32xf32>
    %41 = vector.shape_cast %40 : vector<1x8x32xf32> to vector<8x32xf32>
    %cst_34 = arith.constant dense<0.000000e+00> : vector<8x128xf32>
    %42 = tpu.matmul %41, %3, %cst_34 {dimension_numbers = #tpu.dot_dimension_numbers<[1], [0], [0], [1], [0, 0, 1, 1], [], []>} : vector<8x32xf32>, vector<32x128xf32>, vector<8x128xf32> -> vector<8x128xf32>
    %cst_35 = arith.constant dense<0.000000e+00> : vector<8x128xf32>
    %43 = tpu.matmul %38, %4, %cst_35 {dimension_numbers = #tpu.dot_dimension_numbers<[1], [0], [0], [1], [0, 0, 1, 1], [], []>} : vector<8x128xf32>, vector<128x128xf32>, vector<8x128xf32> -> vector<8x128xf32>
    %44 = arith.addf %42, %43 : vector<8x128xf32>
    %45 = arith.addf %44, %7 : vector<8x128xf32>
    %46 = math.tanh %45 : vector<8x128xf32>
    %c0_36 = arith.constant 0 : index
    %c0_37 = arith.constant 0 : index
    %47 = vector.load %arg9[%c0_36, %c0_37] : memref<8x128xf32, #tpu.memory_space<vmem>>, vector<8x128xf32>
    tpu.vector_store %arg9[%c0_36, %c0_37], %46 {strides = array<i32>} : memref<8x128xf32, #tpu.memory_space<vmem>>, vector<8x128xf32>,
    %c4_i32 = arith.constant 4 : i32
    %c0_38 = arith.constant 0 : index
    %c0_39 = arith.constant 0 : index
    %48 = vector.load %arg9[%c0_38, %c0_39] : memref<8x128xf32, #tpu.memory_space<vmem>>, vector<8x128xf32>
    %49 = arith.index_cast %c4_i32 : i32 to index
    %c0_40 = arith.constant 0 : index
    %c0_41 = arith.constant 0 : index
    %50 = vector.load %arg2[%49, %c0_40, %c0_41] : memref<8x8x32xf32, #tpu.memory_space<vmem>>, vector<1x8x32xf32>
    %51 = vector.shape_cast %50 : vector<1x8x32xf32> to vector<8x32xf32>
    %cst_42 = arith.constant dense<0.000000e+00> : vector<8x128xf32>
    %52 = tpu.matmul %51, %3, %cst_42 {dimension_numbers = #tpu.dot_dimension_numbers<[1], [0], [0], [1], [0, 0, 1, 1], [], []>} : vector<8x32xf32>, vector<32x128xf32>, vector<8x128xf32> -> vector<8x128xf32>
    %cst_43 = arith.constant dense<0.000000e+00> : vector<8x128xf32>
    %53 = tpu.matmul %48, %4, %cst_43 {dimension_numbers = #tpu.dot_dimension_numbers<[1], [0], [0], [1], [0, 0, 1, 1], [], []>} : vector<8x128xf32>, vector<128x128xf32>, vector<8x128xf32> -> vector<8x128xf32>
    %54 = arith.addf %52, %53 : vector<8x128xf32>
    %55 = arith.addf %54, %7 : vector<8x128xf32>
    %56 = math.tanh %55 : vector<8x128xf32>
    %c0_44 = arith.constant 0 : index
    %c0_45 = arith.constant 0 : index
    %57 = vector.load %arg9[%c0_44, %c0_45] : memref<8x128xf32, #tpu.memory_space<vmem>>, vector<8x128xf32>
    tpu.vector_store %arg9[%c0_44, %c0_45], %56 {strides = array<i32>} : memref<8x128xf32, #tpu.memory_space<vmem>>, vector<8x128xf32>,
    %c5_i32 = arith.constant 5 : i32
    %c0_46 = arith.constant 0 : index
    %c0_47 = arith.constant 0 : index
    %58 = vector.load %arg9[%c0_46, %c0_47] : memref<8x128xf32, #tpu.memory_space<vmem>>, vector<8x128xf32>
    %59 = arith.index_cast %c5_i32 : i32 to index
    %c0_48 = arith.constant 0 : index
    %c0_49 = arith.constant 0 : index
    %60 = vector.load %arg2[%59, %c0_48, %c0_49] : memref<8x8x32xf32, #tpu.memory_space<vmem>>, vector<1x8x32xf32>
    %61 = vector.shape_cast %60 : vector<1x8x32xf32> to vector<8x32xf32>
    %cst_50 = arith.constant dense<0.000000e+00> : vector<8x128xf32>
    %62 = tpu.matmul %61, %3, %cst_50 {dimension_numbers = #tpu.dot_dimension_numbers<[1], [0], [0], [1], [0, 0, 1, 1], [], []>} : vector<8x32xf32>, vector<32x128xf32>, vector<8x128xf32> -> vector<8x128xf32>
    %cst_51 = arith.constant dense<0.000000e+00> : vector<8x128xf32>
    %63 = tpu.matmul %58, %4, %cst_51 {dimension_numbers = #tpu.dot_dimension_numbers<[1], [0], [0], [1], [0, 0, 1, 1], [], []>} : vector<8x128xf32>, vector<128x128xf32>, vector<8x128xf32> -> vector<8x128xf32>
    %64 = arith.addf %62, %63 : vector<8x128xf32>
    %65 = arith.addf %64, %7 : vector<8x128xf32>
    %66 = math.tanh %65 : vector<8x128xf32>
    %c0_52 = arith.constant 0 : index
    %c0_53 = arith.constant 0 : index
    %67 = vector.load %arg9[%c0_52, %c0_53] : memref<8x128xf32, #tpu.memory_space<vmem>>, vector<8x128xf32>
    tpu.vector_store %arg9[%c0_52, %c0_53], %66 {strides = array<i32>} : memref<8x128xf32, #tpu.memory_space<vmem>>, vector<8x128xf32>,
    %c6_i32 = arith.constant 6 : i32
    %c0_54 = arith.constant 0 : index
    %c0_55 = arith.constant 0 : index
    %68 = vector.load %arg9[%c0_54, %c0_55] : memref<8x128xf32, #tpu.memory_space<vmem>>, vector<8x128xf32>
    %69 = arith.index_cast %c6_i32 : i32 to index
    %c0_56 = arith.constant 0 : index
    %c0_57 = arith.constant 0 : index
    %70 = vector.load %arg2[%69, %c0_56, %c0_57] : memref<8x8x32xf32, #tpu.memory_space<vmem>>, vector<1x8x32xf32>
    %71 = vector.shape_cast %70 : vector<1x8x32xf32> to vector<8x32xf32>
    %cst_58 = arith.constant dense<0.000000e+00> : vector<8x128xf32>
    %72 = tpu.matmul %71, %3, %cst_58 {dimension_numbers = #tpu.dot_dimension_numbers<[1], [0], [0], [1], [0, 0, 1, 1], [], []>} : vector<8x32xf32>, vector<32x128xf32>, vector<8x128xf32> -> vector<8x128xf32>
    %cst_59 = arith.constant dense<0.000000e+00> : vector<8x128xf32>
    %73 = tpu.matmul %68, %4, %cst_59 {dimension_numbers = #tpu.dot_dimension_numbers<[1], [0], [0], [1], [0, 0, 1, 1], [], []>} : vector<8x128xf32>, vector<128x128xf32>, vector<8x128xf32> -> vector<8x128xf32>
    %74 = arith.addf %72, %73 : vector<8x128xf32>
    %75 = arith.addf %74, %7 : vector<8x128xf32>
    %76 = math.tanh %75 : vector<8x128xf32>
    %c0_60 = arith.constant 0 : index
    %c0_61 = arith.constant 0 : index
    %77 = vector.load %arg9[%c0_60, %c0_61] : memref<8x128xf32, #tpu.memory_space<vmem>>, vector<8x128xf32>
    tpu.vector_store %arg9[%c0_60, %c0_61], %76 {strides = array<i32>} : memref<8x128xf32, #tpu.memory_space<vmem>>, vector<8x128xf32>,
    %c7_i32 = arith.constant 7 : i32
    %c0_62 = arith.constant 0 : index
    %c0_63 = arith.constant 0 : index
    %78 = vector.load %arg9[%c0_62, %c0_63] : memref<8x128xf32, #tpu.memory_space<vmem>>, vector<8x128xf32>
    %79 = arith.index_cast %c7_i32 : i32 to index
    %c0_64 = arith.constant 0 : index
    %c0_65 = arith.constant 0 : index
    %80 = vector.load %arg2[%79, %c0_64, %c0_65] : memref<8x8x32xf32, #tpu.memory_space<vmem>>, vector<1x8x32xf32>
    %81 = vector.shape_cast %80 : vector<1x8x32xf32> to vector<8x32xf32>
    %cst_66 = arith.constant dense<0.000000e+00> : vector<8x128xf32>
    %82 = tpu.matmul %81, %3, %cst_66 {dimension_numbers = #tpu.dot_dimension_numbers<[1], [0], [0], [1], [0, 0, 1, 1], [], []>} : vector<8x32xf32>, vector<32x128xf32>, vector<8x128xf32> -> vector<8x128xf32>
    %cst_67 = arith.constant dense<0.000000e+00> : vector<8x128xf32>
    %83 = tpu.matmul %78, %4, %cst_67 {dimension_numbers = #tpu.dot_dimension_numbers<[1], [0], [0], [1], [0, 0, 1, 1], [], []>} : vector<8x128xf32>, vector<128x128xf32>, vector<8x128xf32> -> vector<8x128xf32>
    %84 = arith.addf %82, %83 : vector<8x128xf32>
    %85 = arith.addf %84, %7 : vector<8x128xf32>
    %86 = math.tanh %85 : vector<8x128xf32>
    %c0_68 = arith.constant 0 : index
    %c0_69 = arith.constant 0 : index
    %87 = vector.load %arg9[%c0_68, %c0_69] : memref<8x128xf32, #tpu.memory_space<vmem>>, vector<8x128xf32>
    tpu.vector_store %arg9[%c0_68, %c0_69], %86 {strides = array<i32>} : memref<8x128xf32, #tpu.memory_space<vmem>>, vector<8x128xf32>,
    %c8_i32 = arith.constant 8 : i32
    %c0_i32_70 = arith.constant 0 : i32
    %88 = arith.cmpi eq, %arg1, %c0_i32_70 : i32
    %89 = arith.extui %88 : i1 to i32
    %c0_i32_71 = arith.constant 0 : i32
    %90 = arith.cmpi ne, %89, %c0_i32_71 : i32
    scf.if %90 {
      %c0_72 = arith.constant 0 : index
      %c0_73 = arith.constant 0 : index
      %91 = vector.load %arg9[%c0_72, %c0_73] : memref<8x128xf32, #tpu.memory_space<vmem>>, vector<8x128xf32>
      %c0_74 = arith.constant 0 : index
      %c0_75 = arith.constant 0 : index
      %92 = vector.load %arg6[%c0_74, %c0_75] : memref<128x128xf32, #tpu.memory_space<vmem>>, vector<128x128xf32>
      %cst_76 = arith.constant dense<0.000000e+00> : vector<8x128xf32>
      %93 = tpu.matmul %91, %92, %cst_76 {dimension_numbers = #tpu.dot_dimension_numbers<[1], [0], [0], [1], [0, 0, 1, 1], [], []>} : vector<8x128xf32>, vector<128x128xf32>, vector<8x128xf32> -> vector<8x128xf32>
      %c0_77 = arith.constant 0 : index
      %c0_78 = arith.constant 0 : index
      %94 = vector.load %arg7[%c0_77, %c0_78] : memref<1x128xf32, #tpu.memory_space<vmem>>, vector<1x128xf32>
      %95 = vector.broadcast %94 : vector<1x128xf32> to vector<8x128xf32>
      %96 = arith.addf %93, %95 : vector<8x128xf32>
      %c0_79 = arith.constant 0 : index
      %c0_80 = arith.constant 0 : index
      %97 = vector.load %arg8[%c0_79, %c0_80] : memref<8x128xf32, #tpu.memory_space<vmem>>, vector<8x128xf32>
      tpu.vector_store %arg8[%c0_79, %c0_80], %96 {strides = array<i32>} : memref<8x128xf32, #tpu.memory_space<vmem>>, vector<8x128xf32>,
    } else {
    }
    return
  }
  func.func @transform_0(%arg0: i32, %arg1: i32) -> (i32, i32, i32) {
    %c0_i32 = arith.constant 0 : i32
    %c0_i32_0 = arith.constant 0 : i32
    return %arg1, %arg0, %c0_i32 : i32, i32, i32
  }
  func.func @transform_1(%arg0: i32, %arg1: i32) -> (i32, i32) {
    %c0_i32 = arith.constant 0 : i32
    %c0_i32_0 = arith.constant 0 : i32
    %c0_i32_1 = arith.constant 0 : i32
    return %c0_i32, %c0_i32_0 : i32, i32
  }
  func.func @transform_2(%arg0: i32, %arg1: i32) -> (i32, i32) {
    %c0_i32 = arith.constant 0 : i32
    %c0_i32_0 = arith.constant 0 : i32
    %c0_i32_1 = arith.constant 0 : i32
    return %c0_i32, %c0_i32_0 : i32, i32
  }
  func.func @transform_3(%arg0: i32, %arg1: i32) -> (i32, i32) {
    %c0_i32 = arith.constant 0 : i32
    %c0_i32_0 = arith.constant 0 : i32
    %c0_i32_1 = arith.constant 0 : i32
    return %c0_i32, %c0_i32_0 : i32, i32
  }
  func.func @transform_4(%arg0: i32, %arg1: i32) -> (i32, i32) {
    %c0_i32 = arith.constant 0 : i32
    %c0_i32_0 = arith.constant 0 : i32
    %c0_i32_1 = arith.constant 0 : i32
    return %c0_i32, %c0_i32_0 : i32, i32
  }
  func.func @transform_5(%arg0: i32, %arg1: i32) -> (i32, i32) {
    %c0_i32 = arith.constant 0 : i32
    %c0_i32_0 = arith.constant 0 : i32
    %c0_i32_1 = arith.constant 0 : i32
    return %c0_i32, %c0_i32_0 : i32, i32
  }
  func.func @transform_6(%arg0: i32, %arg1: i32) -> (i32, i32) {
    %c0_i32 = arith.constant 0 : i32
    %c0_i32_0 = arith.constant 0 : i32
    return %arg0, %c0_i32 : i32, i32
  }
}

</mosaic_0001>

<bundles_post_ra>
// kernel: tpu_custom_call.1
= control target key start
LH: loop header
LB: loop body
LE: loop exit
PB: predicated region body
PF: predicated region fallthrough
CT: control target
= control target key end

     0   :  { %11 = vsyncpa [#allocation4], 0  ;;  %s1016_s0 = inlined_call_operand.hbm [shape: f32[8,8,32], index: 0, kind: input, shape index: {}]   ;;  %s1017_s1 = inlined_call_operand.hbm [shape: f32[32,128], index: 1, kind: input, shape index: {}]   ;;  %s1018_s2 = inlined_call_operand.hbm [shape: f32[128,128], index: 2, kind: input, shape index: {}]   ;;  %s1019_s3 = inlined_call_operand.vmem [shape: f32[1,128], index: 3, kind: input, shape index: {}]   ;;  %s1020_s4 = inlined_call_operand.hbm [shape: f32[128,128], index: 4, kind: input, shape index: {}]   ;;  %s1021_s5 = inlined_call_operand.vmem [shape: f32[1,128], index: 5, kind: input, shape index: {}]   ;;  %s1022_s6 = inlined_call_operand.hbm [shape: f32[8,128], index: 6, kind: output, shape index: {}]  }
   0x1   :  { %12 = vsyncpa [#allocation7], 0 }
   0x2   :  { %13 = vsyncpa [#allocation10], 0 }
   0x3   :  { %14 = vsyncpa [#allocation5], 0  ;;  %s32_s23 = sshll.u32 %s1017_s1, 4  ;;  %s734_s24 = smov [#allocation6]   ;;  %s33_s23 = int_to_ptr.hbm [resolvable:$true] %s32_s23 }
   0x4   :  { %s34_s25 = sshll.u32 %s734_s24, 4  ;;  %s19_s28 = sshll.u32 %s1016_s0, 4  ;;  %s35_s25 = int_to_ptr.vmem [resolvable:$true] %s34_s25  ;;  %s20_s28 = int_to_ptr.hbm [resolvable:$true] %s19_s28 }
   0x5   :  { %s735_s29 = smov 128   ;;  %s736_s30 = smov 8  }
   0x6   :  { %40 = dma.hbm_to_vmem [thread:$0]  %s33_s23, 512, %s35_s25, [#allocation7], %s735_s29, %s735_s29, %s736_s30  }
   0x7   :  { %s737_s7 = smov [#allocation3]   ;;  %s45_s11 = sshll.u32 %s1018_s2, 4  ;;  %s46_s11 = int_to_ptr.hbm [resolvable:$true] %s45_s11 }
   0x8   :  { %s21_s8 = sshll.u32 %s737_s7, 4  ;;  %s60_s13 = sshll.u32 %s1020_s4, 4  ;;  %s22_s8 = int_to_ptr.vmem [resolvable:$true] %s21_s8  ;;  %s61_s13 = int_to_ptr.hbm [resolvable:$true] %s60_s13 }
   0x9   :  { %27 = dma.hbm_to_vmem [thread:$0]  %s20_s28, 1024, %s22_s8, [#allocation4], %s735_s29, %s735_s29, %s736_s30  }
   0xa   :  { %s738_s14 = smov [#allocation8]   ;;  %s739_s0 = smov [#allocation9]  }
   0xb   :  { %s47_s15 = sshll.u32 %s738_s14, 4  ;;  %s62_s16 = sshll.u32 %s739_s0, 4  ;;  %s48_s15 = int_to_ptr.vmem [resolvable:$true] %s47_s15  ;;  %s63_s16 = int_to_ptr.vmem [resolvable:$true] %s62_s16 }
   0xc   :  { %53 = dma.hbm_to_vmem [thread:$0]  %s46_s11, 2048, %s48_s15, [#allocation7], %s735_s29, %s735_s29, %s736_s30  }
   0xd   :  { %68 = dma.hbm_to_vmem [thread:$0]  %s61_s13, 2048, %s63_s16, [#allocation10], %s735_s29, %s735_s29, %s736_s30  }
   0xe   :  { %726 = dma.done.wait [#allocation4], 1024  }
   0xf   :  { %727 = vsyncadd [#allocation4], 4294966272 }
  0x10   :  { %728 = dma.done.wait [#allocation7], 2560  }
  0x11   :  { %729 = vsyncadd [#allocation7], 4294964736 }
  0x12   :  { %730 = dma.done.wait [#allocation10], 2048  }
  0x13   :  { %731 = vsyncadd [#allocation10], 4294965248  ;;  %v789_v0 = vld [vmem:[#allocation8 + $0x78] sm:$0xff]  ;;  %v791_v1 = vld [vmem:[#allocation8 + $0x70] sm:$0xff]  ;;  %vm138_vm0 = vcmask 261120   ;;  %v740_v21 = vmov 0.0  }
  0x14   :  { %118 = vmatpush.msra.mxu0 %v789_v0  ;;  %217 = vmatpush.msra.mxu1 %v789_v0  ;;  %v795_v2 = vld [vmem:[#allocation8 + $0x68] sm:$0xff]  ;;  %v798_v3 = vld [vmem:[#allocation6 + $0x18] sm:$0xff]  ;;  %v801_v4 = vld [vmem:[#allocation8 + $0x60] sm:$0xff]  ;;  %s741_s18 = smov [#allocation11]   ;;  %s560_s22 = sshll.u32 %s1022_s6, 4  ;;  %s561_s22 = int_to_ptr.hbm [resolvable:$true] %s560_s22 }
  0x15   :  { %154 = vmatpush.msra.mxu2 %v798_v3  ;;  %v804_v5 = vld [vmem:[#allocation6 + $0x10] sm:$0xff]  ;;  %203 = vmatpush.msra.mxu3 %v798_v3  ;;  %v808_v6 = vld [vmem:[#allocation6 + $0x8] sm:$0xff]  ;;  %v811_v7 = vld [vmem:[#allocation8 + $0x58] sm:$0xff]  ;;  %s558_s19 = sshll.u32 %s741_s18, 4  ;;  %s559_s19 = int_to_ptr.vmem [resolvable:$true] %s558_s19 }
  0x16   :  { %119 = vmatpush.msra.mxu0 %v791_v1  ;;  %218 = vmatpush.msra.mxu1 %v791_v1  ;;  %v816_v8 = vld [vmem:[#allocation6] sm:$0xff]  ;;  %v819_v9 = vld [vmem:[#allocation8 + $0x50] sm:$0xff]  ;;  %v825_v11 = vld [vmem:[#allocation8 + $0x48] sm:$0xff] }
  0x17   :  { %155 = vmatpush.msra.mxu2 %v804_v5  ;;  %204 = vmatpush.msra.mxu3 %v804_v5  ;;  %v117_v10 = vld [vmem:[#allocation3] sm:$0xff]  ;;  %v837_v13 = vld [vmem:[#allocation8 + $0x38] sm:$0xff]  ;;  %v843_v14 = vld [vmem:[#allocation8 + $0x30] sm:$0xff] }
  0x18   :  { %120 = vmatpush.msra.mxu0 %v795_v2  ;;  %219 = vmatpush.msra.mxu1 %v795_v2  ;;  %v831_v12 = vld [vmem:[#allocation8 + $0x40] sm:$0xff]  ;;  %v849_v15 = vld [vmem:[#allocation8 + $0x28] sm:$0xff]  ;;  %v860_v17 = vld [vmem:[#allocation8 + $0x18] sm:$0xff] }
  0x19   :  { %156 = vmatpush.msra.mxu2 %v808_v6  ;;  %205 = vmatpush.msra.mxu3 %v808_v6  ;;  %v855_v16 = vld [vmem:[#allocation8 + $0x20] sm:$0xff]  ;;  %v865_v18 = vld [vmem:[#allocation8 + $0x10] sm:$0xff]  ;;  %v870_v19 = vld [vmem:[#allocation8 + $0x8] sm:$0xff] }
  0x1a   :  { %121 = vmatpush.msra.mxu0 %v801_v4  ;;  %220 = vmatpush.msra.mxu1 %v801_v4  ;;  %v875_v20 = vld [vmem:[#allocation8] sm:$0xff]  ;;  %v167_v22 = vld [vmem:[#allocation3 + $0x8] sm:$0xff]  ;;  %v216_v29 = vld [vmem:[#allocation3 + $0x10] sm:$0xff] }
  0x1b   :  { %157 = vmatpush.msra.mxu2 %v816_v8  ;;  %206 = vmatpush.msra.mxu3 %v816_v8  ;;  %v931_v24 = vld [vmem:[%s1019_s3] ss:$0 sm:$0xff]  ;;  %v265_v35 = vld [vmem:[#allocation3 + $0x18] sm:$0xff]  ;;  %v363_v47 = vld [vmem:[#allocation3 + $0x28] sm:$0xff] }
  0x1c   :  { %122 = vmatpush.msra.mxu0 %v811_v7  ;;  %221 = vmatpush.msra.mxu1 %v811_v7  ;;  %v314_v41 = vld [vmem:[#allocation3 + $0x20] sm:$0xff]  ;;  %v412_v53 = vld [vmem:[#allocation3 + $0x30] sm:$0xff]  ;;  %v461_v59 = vld [vmem:[#allocation3 + $0x38] sm:$0xff] }
  0x1d   :  { %572 = vmatmul.msk.f32.vlgmr.msra.gmra.mxu2 %vm138_vm0, %v117_v10  ;;  %252 = vmatpush.msrb.mxu3 %v798_v3  ;;  %v527_v60 = vld [vmem:[#allocation9 + $0x78] sm:$0xff]  ;;  %v526_v61 = vld [vmem:[#allocation9 + $0x70] sm:$0xff]  ;;  %v525_v62 = vld [vmem:[#allocation9 + $0x68] sm:$0xff] }
  0x1e   :  { %123 = vmatpush.msra.mxu0 %v819_v9  ;;  %168 = vmatpush.msrb.mxu2 %v789_v0  ;;  %v524_v63 = vld [vmem:[#allocation9 + $0x60] sm:$0xff] }
  0x1f   :  { %222 = vmatpush.msra.mxu1 %v819_v9  ;;  %253 = vmatpush.msrb.mxu3 %v804_v5 }
  0x20   :  { %124 = vmatpush.msra.mxu0 %v825_v11  ;;  %169 = vmatpush.msrb.mxu2 %v791_v1 }
  0x21   :  { %223 = vmatpush.msra.mxu1 %v825_v11  ;;  %254 = vmatpush.msrb.mxu3 %v808_v6 }
  0x22   :  { %125 = vmatpush.msra.mxu0 %v831_v12  ;;  %170 = vmatpush.msrb.mxu2 %v795_v2 }
  0x23   :  { %224 = vmatpush.msra.mxu1 %v831_v12  ;;  %255 = vmatpush.msrb.mxu3 %v816_v8 }
  0x24   :  { %126 = vmatpush.msra.mxu0 %v837_v13  ;;  %171 = vmatpush.msrb.mxu2 %v801_v4 }
  0x25   :  { %225 = vmatpush.msra.mxu1 %v837_v13  ;;  %573 = vmatmul.msk.f32.vlgmr.msra.gmra.mxu3 %vm138_vm0, %v167_v22  ;;  %v589_v22 = vld [vmem:[%s1021_s5] ss:$0 sm:$0xff] }
  0x26   :  { %127 = vmatpush.msra.mxu0 %v843_v14  ;;  %172 = vmatpush.msrb.mxu2 %v811_v7 }
  0x27   :  { %226 = vmatpush.msra.mxu1 %v843_v14  ;;  %266 = vmatpush.msra.mxu3 %v789_v0 }
  0x28   :  { %128 = vmatpush.msra.mxu0 %v849_v15  ;;  %173 = vmatpush.msrb.mxu2 %v819_v9 }
  0x29   :  { %227 = vmatpush.msra.mxu1 %v849_v15  ;;  %267 = vmatpush.msra.mxu3 %v791_v1 }
  0x2a   :  { %129 = vmatpush.msra.mxu0 %v855_v16  ;;  %174 = vmatpush.msrb.mxu2 %v825_v11 }
  0x2b   :  { %228 = vmatpush.msra.mxu1 %v855_v16  ;;  %268 = vmatpush.msra.mxu3 %v795_v2 }
  0x2c   :  { %130 = vmatpush.msra.mxu0 %v860_v17  ;;  %175 = vmatpush.msrb.mxu2 %v831_v12 }
  0x2d   :  { %229 = vmatpush.msra.mxu1 %v860_v17  ;;  %269 = vmatpush.msra.mxu3 %v801_v4 }
  0x2e   :  { %131 = vmatpush.msra.mxu0 %v865_v18  ;;  %176 = vmatpush.msrb.mxu2 %v837_v13 }
  0x2f   :  { %230 = vmatpush.msra.mxu1 %v865_v18  ;;  %270 = vmatpush.msra.mxu3 %v811_v7 }
  0x30   :  { %132 = vmatpush.msra.mxu0 %v870_v19  ;;  %177 = vmatpush.msrb.mxu2 %v843_v14 }
  0x31   :  { %231 = vmatpush.msra.mxu1 %v870_v19  ;;  %271 = vmatpush.msra.mxu3 %v819_v9 }
  0x32   :  { %133 = vmatpush.msra.mxu0 %v875_v20  ;;  %178 = vmatpush.msrb.mxu2 %v849_v15 }
  0x33   :  { %134 = vmatmul.f32.vlgmr.msra.gmra.mxu0 %v740_v21  ;;  %232 = vmatpush.msra.mxu1 %v875_v20 }
  0x34   :  { %350 = vmatpush.msrb.mxu0 %v798_v3  ;;  %179 = vmatpush.msrb.mxu2 %v855_v16 }
  0x35   :  { %364 = vmatpush.msrb.mxu1 %v789_v0  ;;  %272 = vmatpush.msra.mxu3 %v825_v11 }
  0x36   :  { %351 = vmatpush.msrb.mxu0 %v804_v5  ;;  %180 = vmatpush.msrb.mxu2 %v860_v17 }
  0x37   :  { %365 = vmatpush.msrb.mxu1 %v791_v1  ;;  %273 = vmatpush.msra.mxu3 %v831_v12 }
  0x38   :  { %352 = vmatpush.msrb.mxu0 %v808_v6  ;;  %181 = vmatpush.msrb.mxu2 %v865_v18 }
  0x39   :  { %366 = vmatpush.msrb.mxu1 %v795_v2  ;;  %274 = vmatpush.msra.mxu3 %v837_v13 }
  0x3a   :  { %353 = vmatpush.msrb.mxu0 %v816_v8  ;;  %182 = vmatpush.msrb.mxu2 %v870_v19 }
  0x3b   :  { %367 = vmatpush.msrb.mxu1 %v801_v4  ;;  %275 = vmatpush.msra.mxu3 %v843_v14 }
  0x3c   :  { %399 = vmatpush.msra.mxu0 %v798_v3  ;;  %183 = vmatpush.msrb.mxu2 %v875_v20 }
  0x3d   :  { %368 = vmatpush.msrb.mxu1 %v811_v7  ;;  %276 = vmatpush.msra.mxu3 %v849_v15 }
  0x3e   :  { %301 = vmatpush.msra.mxu2 %v798_v3  ;;  %400 = vmatpush.msra.mxu0 %v804_v5 }
  0x3f   :  { %369 = vmatpush.msrb.mxu1 %v819_v9  ;;  %277 = vmatpush.msra.mxu3 %v855_v16 }
  0x40   :  { %302 = vmatpush.msra.mxu2 %v804_v5  ;;  %401 = vmatpush.msra.mxu0 %v808_v6 }
  0x41   :  { %370 = vmatpush.msrb.mxu1 %v825_v11  ;;  %278 = vmatpush.msra.mxu3 %v860_v17 }
  0x42   :  { %303 = vmatpush.msra.mxu2 %v808_v6  ;;  %402 = vmatpush.msra.mxu0 %v816_v8 }
  0x43   :  { %371 = vmatpush.msrb.mxu1 %v831_v12  ;;  %279 = vmatpush.msra.mxu3 %v865_v18 }
  0x44   :  { %304 = vmatpush.msra.mxu2 %v816_v8  ;;  %574 = vmatmul.msk.f32.vlgmr.msrb.gmra.mxu3 %vm138_vm0, %v216_v29 }
  0x45   :  { %372 = vmatpush.msrb.mxu1 %v837_v13  ;;  %280 = vmatpush.msra.mxu3 %v870_v19 }
  0x46   :  { %576 = vmatmul.msk.f32.vlgmr.msrb.gmra.mxu0 %vm138_vm0, %v314_v41 }
  0x47   :  { %373 = vmatpush.msrb.mxu1 %v843_v14  ;;  %281 = vmatpush.msra.mxu3 %v875_v20 }
  0x48   :  { %448 = vmatpush.msrb.mxu0 %v798_v3 }
  0x49   :  { %374 = vmatpush.msrb.mxu1 %v849_v15  ;;  %413 = vmatpush.msrb.mxu3 %v789_v0 }
  0x4a   :  { %449 = vmatpush.msrb.mxu0 %v804_v5 }
  0x4b   :  { %375 = vmatpush.msrb.mxu1 %v855_v16  ;;  %414 = vmatpush.msrb.mxu3 %v791_v1 }
  0x4c   :  { %450 = vmatpush.msrb.mxu0 %v808_v6 }
  0x4d   :  { %376 = vmatpush.msrb.mxu1 %v860_v17  ;;  %415 = vmatpush.msrb.mxu3 %v795_v2 }
  0x4e   :  { %451 = vmatpush.msrb.mxu0 %v816_v8 }
  0x4f   :  { %377 = vmatpush.msrb.mxu1 %v865_v18  ;;  %416 = vmatpush.msrb.mxu3 %v801_v4 }
  0x50   :  { %577 = vmatmul.msk.f32.vlgmr.msra.gmra.mxu0 %vm138_vm0, %v363_v47 }
  0x51   :  { %378 = vmatpush.msrb.mxu1 %v870_v19  ;;  %417 = vmatpush.msrb.mxu3 %v811_v7 }
  0x52   :  { %462 = vmatpush.msra.mxu0 %v789_v0 }
  0x53   :  { %379 = vmatpush.msrb.mxu1 %v875_v20  ;;  %418 = vmatpush.msrb.mxu3 %v819_v9 }
  0x54   :  { %463 = vmatpush.msra.mxu0 %v791_v1 }
  0x55   :  { %419 = vmatpush.msrb.mxu3 %v825_v11 }
  0x56   :  { %464 = vmatpush.msra.mxu0 %v795_v2 }
  0x57   :  { %420 = vmatpush.msrb.mxu3 %v831_v12 }
  0x58   :  { %465 = vmatpush.msra.mxu0 %v801_v4 }
  0x59   :  { %421 = vmatpush.msrb.mxu3 %v837_v13  ;;  %578 = vmatmul.msk.f32.vlgmr.msrb.gmra.mxu0 %vm138_vm0, %v412_v53 }
  0x5a   :  { %466 = vmatpush.msra.mxu0 %v811_v7 }
  0x5b   :  { %422 = vmatpush.msrb.mxu3 %v843_v14 }
  0x5c   :  { %467 = vmatpush.msra.mxu0 %v819_v9 }
  0x5d   :  { %423 = vmatpush.msrb.mxu3 %v849_v15 }
  0x5e   :  { %468 = vmatpush.msra.mxu0 %v825_v11 }
  0x5f   :  { %424 = vmatpush.msrb.mxu3 %v855_v16 }
  0x60   :  { %469 = vmatpush.msra.mxu0 %v831_v12 }
  0x61   :  { %425 = vmatpush.msrb.mxu3 %v860_v17 }
  0x62   :  { %470 = vmatpush.msra.mxu0 %v837_v13 }
  0x63   :  { %426 = vmatpush.msrb.mxu3 %v865_v18 }
  0x64   :  { %471 = vmatpush.msra.mxu0 %v843_v14 }
  0x65   :  { %427 = vmatpush.msrb.mxu3 %v870_v19 }
  0x66   :  { %472 = vmatpush.msra.mxu0 %v849_v15 }
  0x67   :  { %428 = vmatpush.msrb.mxu3 %v875_v20 }
  0x68   :  { %473 = vmatpush.msra.mxu0 %v855_v16 }
  0x6a   :  { %474 = vmatpush.msra.mxu0 %v860_v17 }
  0x6c   :  { %475 = vmatpush.msra.mxu0 %v865_v18 }
  0x6e   :  { %476 = vmatpush.msra.mxu0 %v870_v19 }
  0x70   :  { %477 = vmatpush.msra.mxu0 %v875_v20 }
  0xa0   :  { %v159_v23 = vpop.f32.mrf.mxu2 }
  0xa8   :  { %v208_v30 = vpop.f32.mrf.mxu3 }
  0xb0   :  { %v135_v25 = vpop.f32.mrf.mxu0 }
  0xb1   :  { %v160_v26 = vadd.f32 %v159_v23, %v135_v25 }
  0xb3   :  { %v162_v27 = vadd.f32 %v931_v24, %v160_v26 }
  0xb5   :  { %590 = vtanh.f32 %v162_v27 }
  0xbb   :  { %v591_v28 = vpop.eup %590 }
  0xbc   :  { %184 = vmatmul.f32.vlgmr.msrb.gmra.mxu2 %v591_v28 }
  0xbd   :  { %315 = vmatpush.msrb.mxu2 %v789_v0  ;;  %v523_v0 = vld [vmem:[#allocation9 + $0x58] sm:$0xff] }
  0xbf   :  { %316 = vmatpush.msrb.mxu2 %v791_v1  ;;  %v522_v1 = vld [vmem:[#allocation9 + $0x50] sm:$0xff] }
  0xc1   :  { %317 = vmatpush.msrb.mxu2 %v795_v2  ;;  %v521_v2 = vld [vmem:[#allocation9 + $0x48] sm:$0xff] }
  0xc3   :  { %318 = vmatpush.msrb.mxu2 %v801_v4  ;;  %v355_v48 = vpop.f32.mrf.mxu0  ;;  %v519_v4 = vld [vmem:[#allocation9 + $0x38] sm:$0xff] }
  0xc4   :  { %575 = vmatmul.msk.f32.vlgmr.msra.gmra.mxu2 %vm138_vm0, %v265_v35 }
  0xc5   :  { %319 = vmatpush.msrb.mxu2 %v811_v7 }
  0xc7   :  { %320 = vmatpush.msrb.mxu2 %v819_v9  ;;  %v257_v36 = vpop.f32.mrf.mxu3 }
  0xc9   :  { %321 = vmatpush.msrb.mxu2 %v825_v11  ;;  %v517_v11 = vld [vmem:[#allocation9 + $0x28] sm:$0xff] }
  0xcb   :  { %322 = vmatpush.msrb.mxu2 %v831_v12  ;;  %v516_v12 = vld [vmem:[#allocation9 + $0x20] sm:$0xff] }
  0xcd   :  { %323 = vmatpush.msrb.mxu2 %v837_v13  ;;  %v404_v54 = vpop.f32.mrf.mxu0  ;;  %v515_v13 = vld [vmem:[#allocation9 + $0x18] sm:$0xff] }
  0xcf   :  { %324 = vmatpush.msrb.mxu2 %v843_v14  ;;  %v514_v14 = vld [vmem:[#allocation9 + $0x10] sm:$0xff] }
  0xd1   :  { %325 = vmatpush.msrb.mxu2 %v849_v15  ;;  %v513_v15 = vld [vmem:[#allocation9 + $0x8] sm:$0xff] }
  0xd3   :  { %326 = vmatpush.msrb.mxu2 %v855_v16  ;;  %v512_v16 = vld [vmem:[#allocation9] sm:$0xff] }
  0xd5   :  { %327 = vmatpush.msrb.mxu2 %v860_v17 }
  0xd7   :  { %328 = vmatpush.msrb.mxu2 %v865_v18 }
  0xd9   :  { %329 = vmatpush.msrb.mxu2 %v870_v19 }
  0xdb   :  { %330 = vmatpush.msrb.mxu2 %v875_v20 }
  0xdd   :  { %497 = vmatpush.msra.mxu2 %v798_v3  ;;  %v520_v3 = vld [vmem:[#allocation9 + $0x40] sm:$0xff] }
  0xdf   :  { %498 = vmatpush.msra.mxu2 %v804_v5  ;;  %v518_v5 = vld [vmem:[#allocation9 + $0x30] sm:$0xff] }
  0xe1   :  { %499 = vmatpush.msra.mxu2 %v808_v6  ;;  %v453_v6 = vpop.f32.mrf.mxu0 }
  0xe3   :  { %500 = vmatpush.msra.mxu2 %v816_v8 }
 0x13f   :  { %v185_v31 = vpop.f32.mrf.mxu2 }
 0x140   :  { %v209_v32 = vadd.f32 %v208_v30, %v185_v31 }
 0x142   :  { %v211_v33 = vadd.f32 %v931_v24, %v209_v32 }
 0x144   :  { %592 = vtanh.f32 %v211_v33 }
 0x147   :  { %v306_v42 = vpop.f32.mrf.mxu2 }
 0x14a   :  { %v593_v34 = vpop.eup %592 }
 0x14b   :  { %233 = vmatmul.f32.vlgmr.msra.gmra.mxu1 %v593_v34 }
 0x14c   :  { %532 = vmatpush.msra.mxu1 %v527_v60 }
 0x14e   :  { %533 = vmatpush.msra.mxu1 %v526_v61 }
 0x150   :  { %534 = vmatpush.msra.mxu1 %v525_v62 }
 0x152   :  { %535 = vmatpush.msra.mxu1 %v524_v63 }
 0x154   :  { %536 = vmatpush.msra.mxu1 %v523_v0 }
 0x156   :  { %537 = vmatpush.msra.mxu1 %v522_v1 }
 0x158   :  { %538 = vmatpush.msra.mxu1 %v521_v2 }
 0x15a   :  { %539 = vmatpush.msra.mxu1 %v520_v3 }
 0x15c   :  { %540 = vmatpush.msra.mxu1 %v519_v4 }
 0x15e   :  { %541 = vmatpush.msra.mxu1 %v518_v5 }
 0x160   :  { %542 = vmatpush.msra.mxu1 %v517_v11 }
 0x162   :  { %543 = vmatpush.msra.mxu1 %v516_v12 }
 0x164   :  { %544 = vmatpush.msra.mxu1 %v515_v13 }
 0x166   :  { %545 = vmatpush.msra.mxu1 %v514_v14 }
 0x168   :  { %546 = vmatpush.msra.mxu1 %v513_v15 }
 0x16a   :  { %547 = vmatpush.msra.mxu1 %v512_v16 }
 0x1c8   :  { %v234_v37 = vpop.f32.mrf.mxu1 }
 0x1c9   :  { %v258_v38 = vadd.f32 %v257_v36, %v234_v37 }
 0x1cb   :  { %v260_v39 = vadd.f32 %v931_v24, %v258_v38 }
 0x1cd   :  { %594 = vtanh.f32 %v260_v39 }
 0x1d3   :  { %v595_v40 = vpop.eup %594 }
 0x1d4   :  { %282 = vmatmul.f32.vlgmr.msra.gmra.mxu3 %v595_v40 }
 0x257   :  { %v283_v43 = vpop.f32.mrf.mxu3 }
 0x258   :  { %v307_v44 = vadd.f32 %v306_v42, %v283_v43 }
 0x25a   :  { %v309_v45 = vadd.f32 %v931_v24, %v307_v44 }
 0x25c   :  { %596 = vtanh.f32 %v309_v45 }
 0x262   :  { %v597_v46 = vpop.eup %596 }
 0x263   :  { %331 = vmatmul.f32.vlgmr.msrb.gmra.mxu2 %v597_v46 }
 0x26b   :  { %579 = vmatmul.msk.f32.vlgmr.msra.gmra.mxu2 %vm138_vm0, %v461_v59 }
 0x2e6   :  { %v332_v49 = vpop.f32.mrf.mxu2 }
 0x2e7   :  { %v356_v50 = vadd.f32 %v355_v48, %v332_v49 }
 0x2e9   :  { %v358_v51 = vadd.f32 %v931_v24, %v356_v50 }
 0x2eb   :  { %598 = vtanh.f32 %v358_v51 }
 0x2ee   :  { %v502_v17 = vpop.f32.mrf.mxu2 }
 0x2f1   :  { %v599_v52 = vpop.eup %598 }
 0x2f2   :  { %380 = vmatmul.f32.vlgmr.msrb.gmra.mxu1 %v599_v52 }
 0x36f   :  { %v381_v55 = vpop.f32.mrf.mxu1 }
 0x370   :  { %v405_v56 = vadd.f32 %v404_v54, %v381_v55 }
 0x372   :  { %v407_v57 = vadd.f32 %v931_v24, %v405_v56 }
 0x374   :  { %600 = vtanh.f32 %v407_v57 }
 0x37a   :  { %v601_v58 = vpop.eup %600 }
 0x37b   :  { %429 = vmatmul.f32.vlgmr.msrb.gmra.mxu3 %v601_v58 }
 0x3fe   :  { %v430_v7 = vpop.f32.mrf.mxu3 }
 0x3ff   :  { %v454_v8 = vadd.f32 %v453_v6, %v430_v7 }
 0x401   :  { %v456_v9 = vadd.f32 %v931_v24, %v454_v8 }
 0x403   :  { %602 = vtanh.f32 %v456_v9 }
 0x409   :  { %v603_v10 = vpop.eup %602 }
 0x40a   :  { %478 = vmatmul.f32.vlgmr.msra.gmra.mxu0 %v603_v10 }
 0x487   :  { %v479_v18 = vpop.f32.mrf.mxu0 }
 0x488   :  { %v503_v19 = vadd.f32 %v502_v17, %v479_v18 }
 0x48a   :  { %v505_v20 = vadd.f32 %v931_v24, %v503_v19 }
 0x48c   :  { %604 = vtanh.f32 %v505_v20 }
 0x492   :  { %v605_v21 = vpop.eup %604 }
 0x493   :  { %548 = vmatmul.f32.vlgmr.msra.gmra.mxu1 %v605_v21 }
 0x510   :  { %v549_v23 = vpop.f32.mrf.mxu1 }
 0x511   :  { %v550_v25 = vadd.f32 %v589_v22, %v549_v23 }
 0x513   :  { %552 = vst [vmem:[#allocation11] sm:$0xff] %v550_v25 }
 0x514   :  { %563 = dma.vmem_to_hbm [thread:$0]  %s559_s19, 128, %s561_s22, [#allocation5]  }
 0x515   :  { %732 = dma.done.wait [#allocation5], 128  }
 0x516   :  { %733 = vsyncadd [#allocation5], 4294967168 }
 0x517   :  { %568 = vsyncpa [#allocation4], 1 }
 0x518   :  { %569 = vsyncpa [#allocation7], 1 }
 0x519   :  { %570 = vsyncpa [#allocation10], 1 }
 0x51a   :  { %571 = vsyncpa [#allocation5], 1 }

</bundles_post_ra>
